<compile_context>
chip_gen: v6e
topology: v6e:2x2x1
jax: 0.10.0
libtpu: 0.0.40
codegen_flags: <defaults>
</compile_context>

<pallas_src>
import functools

import jax
import jax.numpy as jnp
from jax.experimental import pallas as pl
from jax.experimental.pallas import tpu as pltpu

LANE = 128                       # lane width; channels stored padded to this
VMEM_LIMIT = 40 * 1024 * 1024    # < v7x's 64 MiB physical VMEM, >> block needs


def _rup(x, m):
    return (x + m - 1) // m * m


# ----------------------------------------------------------------------------
# Fused matmul + BN(scale,bias) + optional residual + optional ReLU.
# Whole contraction dim resident in one block; weight block constant across
# the (single, parallel) row-tile grid axis -> streamed from HBM exactly once.
# ----------------------------------------------------------------------------
def _pick_tm(M, K, Np):
    if M <= 16:
        return M
    cap = min((2 << 20) // (2 * K),      # x tile        <= 2 MiB (bf16)
              (2 << 20) // (2 * Np),     # out bf16 tile <= 2 MiB (f32 temp 4)
              4096)
    cap = max(128, (cap // 8) * 8)
    half = _rup(-(-M // 2), 8)           # >= 2 grid steps so both v7x TCs work
    return min(cap, half)


@functools.lru_cache(maxsize=None)
def _matmul_fn(M, K, Np, TM, relu, has_res):
    def kernel(x_ref, w_ref, sb_ref, *rest):
        if has_res:
            r_ref, o_ref = rest
        else:
            (o_ref,) = rest
        y = jnp.dot(x_ref[...], w_ref[...], preferred_element_type=jnp.float32)
        y = y * sb_ref[0:1, :] + sb_ref[1:2, :]
        if has_res:
            y = y + r_ref[...].astype(jnp.float32)
        if relu:
            y = jnp.maximum(y, 0.0)
        o_ref[...] = y.astype(o_ref.dtype)

    in_specs = [
        pl.BlockSpec((TM, K), lambda i: (i, 0)),
        pl.BlockSpec((K, Np), lambda i: (0, 0)),   # weight resident across i
        pl.BlockSpec((2, Np), lambda i: (0, 0)),   # packed scale/bias resident
    ]
    if has_res:
        in_specs.append(pl.BlockSpec((TM, Np), lambda i: (i, 0)))

    bytes_acc = 2 * (M * K + K * Np + M * Np * (2 if has_res else 1)) + 8 * Np
    call = pl.pallas_call(
        kernel,
        out_shape=jax.ShapeDtypeStruct((M, Np), jnp.bfloat16),
        grid_spec=pltpu.PrefetchScalarGridSpec(
            num_scalar_prefetch=0,
            grid=(pl.cdiv(M, TM),),
            in_specs=in_specs,
            out_specs=pl.BlockSpec((TM, Np), lambda i: (i, 0)),
        ),
        compiler_params=pltpu.CompilerParams(
            dimension_semantics=("parallel",),
            vmem_limit_bytes=VMEM_LIMIT,
        ),
        cost_estimate=pl.CostEstimate(
            flops=int(2 * M * K * Np),
            transcendentals=0,
            bytes_accessed=int(bytes_acc),
        ),
    )
    return jax.jit(call)


def fused_matmul(x, w, sb, *, relu, residual=None):
    M, K = x.shape
    Np = w.shape[1]
    TM = _pick_tm(M, K, Np)
    fn = _matmul_fn(M, K, Np, TM, bool(relu), residual is not None)
    if residual is not None:
        return fn(x, w, sb, residual)
    return fn(x, w, sb)


# ----------------------------------------------------------------------------
# Direct 3x3 stride-1 conv (+ BN + ReLU): no im2col.  The padded image is
# flattened to rows; tap (kh, kw) is the row window shifted by kh*(W+2)+kw.
# Junk columns (the 2 right-pad positions of each row) are dropped afterwards.
# ----------------------------------------------------------------------------
@functools.lru_cache(maxsize=None)
def _conv3x3_fn(N, H, W, C, Co, Rpad):
    Wp = W + 2
    Mf = H * Wp                                   # padded-width rows per image
    offs = tuple(kh * Wp + kw for kh in range(3) for kw in range(3))

    def kernel(x_ref, w_ref, sb_ref, o_ref):
        acc = jnp.dot(x_ref[0, offs[0]:offs[0] + Mf, :], w_ref[0],
                      preferred_element_type=jnp.float32)
        for t in range(1, 9):
            acc = acc + jnp.dot(x_ref[0, offs[t]:offs[t] + Mf, :], w_ref[t],
                                preferred_element_type=jnp.float32)
        y = acc * sb_ref[0:1, :] + sb_ref[1:2, :]
        y = jnp.maximum(y, 0.0)
        o_ref[0] = y.astype(o_ref.dtype)

    call = pl.pallas_call(
        kernel,
        out_shape=jax.ShapeDtypeStruct((N, Mf, Co), jnp.bfloat16),
        grid_spec=pltpu.PrefetchScalarGridSpec(
            num_scalar_prefetch=0,
            grid=(N,),
            in_specs=[
                pl.BlockSpec((1, Rpad, C), lambda n: (n, 0, 0)),
                pl.BlockSpec((9, C, Co), lambda n: (0, 0, 0)),   # resident
                pl.BlockSpec((2, Co), lambda n: (0, 0)),         # resident
            ],
            out_specs=pl.BlockSpec((1, Mf, Co), lambda n: (n, 0, 0)),
        ),
        compiler_params=pltpu.CompilerParams(
            dimension_semantics=("parallel",),
            vmem_limit_bytes=VMEM_LIMIT,
        ),
        cost_estimate=pl.CostEstimate(
            flops=int(2 * N * Mf * 9 * C * Co),
            transcendentals=0,
            bytes_accessed=int(2 * (N * Rpad * C + 9 * C * Co + N * Mf * Co)
                               + 8 * Co),
        ),
    )
    return jax.jit(call)


def conv3x3_direct(x, cp):
    # 3x3, stride 1, pad 1 + BN + ReLU.
    N, H, W, C = x.shape
    Co = cp["w"].shape[-1]
    Hp, Wp = H + 2, W + 2
    Rpad = _rup(Hp * Wp + 2, 8)     # +2: last tap of the last junk column
    xf = jnp.pad(x, ((0, 0), (1, 1), (1, 1), (0, 0))).reshape(N, Hp * Wp, C)
    xf = jnp.pad(xf, ((0, 0), (0, Rpad - Hp * Wp), (0, 0)))
    y = _conv3x3_fn(N, H, W, C, Co, Rpad)(xf, cp["w"], cp["sb"])
    # drop the two junk columns produced by the padded-width row layout
    return y.reshape(N, H, Wp, Co)[:, :, :W, :]


# ----------------------------------------------------------------------------
# im2col conv (stem 7x7 s2 and the three 3x3 s2 convs only) and 1x1 convs.
# ----------------------------------------------------------------------------
def conv_im2col(x, cp, *, stride, padding, relu):
    N, H, W, C = x.shape
    KH, KW = cp["kh"], cp["kw"]
    K, Np = cp["w"].shape
    Ho = (H + 2 * padding - KH) // stride + 1
    Wo = (W + 2 * padding - KW) // stride + 1
    xp = jnp.pad(x, ((0, 0), (padding, padding), (padding, padding), (0, 0)))
    cols = [xp[:, kh:kh + stride * Ho:stride, kw:kw + stride * Wo:stride, :]
            for kh in range(KH) for kw in range(KW)]
    patches = jnp.concatenate(cols, axis=-1).reshape(N * Ho * Wo, K)
    out = fused_matmul(patches, cp["w"], cp["sb"], relu=relu)
    return out.reshape(N, Ho, Wo, Np)


def conv1x1(x, cp, *, relu, stride=1, residual=None):
    if stride != 1:
        x = x[:, ::stride, ::stride, :]
    N, H, W, C = x.shape
    Np = cp["w"].shape[1]
    res = None if residual is None else residual.reshape(N * H * W, Np)
    out = fused_matmul(x.reshape(N * H * W, C), cp["w"], cp["sb"],
                       relu=relu, residual=res)
    return out.reshape(N, H, W, Np)


# ----------------------------------------------------------------------------
# Maxpool 3x3 s2 p1 and global average pool.
# ----------------------------------------------------------------------------
@functools.lru_cache(maxsize=None)
def _maxpool_win_fn(N, H, W, C):
    # stride-1 3x3 window max over the zero-padded image (input is post-ReLU,
    # so zero padding is equivalent to -inf padding).
    def kernel(x_ref, o_ref):
        r = x_ref[0, 0:H, 0:W, :]
        for kh in range(3):
            for kw in range(3):
                if kh == 0 and kw == 0:
                    continue
                r = jnp.maximum(r, x_ref[0, kh:kh + H, kw:kw + W, :])
        o_ref[0] = r

    call = pl.pallas_call(
        kernel,
        out_shape=jax.ShapeDtypeStruct((N, H, W, C), jnp.bfloat16),
        grid_spec=pltpu.PrefetchScalarGridSpec(
            num_scalar_prefetch=0,
            grid=(N,),
            in_specs=[pl.BlockSpec((1, H + 2, W + 2, C),
                                   lambda n: (n, 0, 0, 0))],
            out_specs=pl.BlockSpec((1, H, W, C), lambda n: (n, 0, 0, 0)),
        ),
        compiler_params=pltpu.CompilerParams(
            dimension_semantics=("parallel",),
            vmem_limit_bytes=VMEM_LIMIT,
        ),
    )
    return jax.jit(call)


def maxpool_3x3_s2_p1(x):
    N, H, W, C = x.shape
    xp = jnp.pad(x, ((0, 0), (1, 1), (1, 1), (0, 0)))
    win = _maxpool_win_fn(N, H, W, C)(xp)
    return win[:, ::2, ::2, :]          # stride-2 subsample (XLA slice)


@functools.lru_cache(maxsize=None)
def _avgpool_fn(N, HW, C, NB):
    def kernel(x_ref, o_ref):
        o_ref[...] = jnp.sum(x_ref[...].astype(jnp.float32), axis=1) * (1.0 / HW)

    call = pl.pallas_call(
        kernel,
        out_shape=jax.ShapeDtypeStruct((N, C), jnp.float32),
        grid_spec=pltpu.PrefetchScalarGridSpec(
            num_scalar_prefetch=0,
            grid=(pl.cdiv(N, NB),),
            in_specs=[pl.BlockSpec((NB, HW, C), lambda i: (i, 0, 0))],
            out_specs=pl.BlockSpec((NB, C), lambda i: (i, 0)),
        ),
        compiler_params=pltpu.CompilerParams(
            dimension_semantics=("parallel",),
            vmem_limit_bytes=VMEM_LIMIT,
        ),
    )
    return jax.jit(call)


def global_avgpool(x):
    N, H, W, C = x.shape
    NB = min(N, 8)
    return _avgpool_fn(N, H * W, C, NB)(x.reshape(N, H * W, C))


# ----------------------------------------------------------------------------
# ResNet-50 structure (torchvision Bottleneck, eval-mode BN folded)
# ----------------------------------------------------------------------------
def bottleneck(x, bp):
    identity = x
    out = conv1x1(x, bp["c1"], relu=True)
    if bp["stride"] == 1:
        out = conv3x3_direct(out, bp["c2"])
    else:
        out = conv_im2col(out, bp["c2"], stride=bp["stride"], padding=1,
                          relu=True)
    if "cd" in bp:
        identity = conv1x1(x, bp["cd"], stride=bp["stride"], relu=False)
    # conv3 + bn3 + residual add + relu fused inside the matmul kernel
    out = conv1x1(out, bp["c3"], relu=True, residual=identity)
    return out


def resnet50_forward(x_nchw, pp):
    # input NCHW -> internal NHWC bf16; output (N, 2048) f32
    x = jnp.transpose(x_nchw, (0, 2, 3, 1)).astype(jnp.bfloat16)
    x = conv_im2col(x, pp["stem"], stride=2, padding=3, relu=True)
    x = maxpool_3x3_s2_p1(x)
    for lname in ("layer1", "layer2", "layer3", "layer4"):
        for bp in pp[lname]:
            x = bottleneck(x, bp)
    return global_avgpool(x)  # == avgpool(...).squeeze(-1).squeeze(-1)


# ----------------------------------------------------------------------------
# One-time parameter preparation: weight layout, bf16 cast, channel padding to
# lane multiples, BN scale/bias folded and packed into one (2, Cout) operand.
# ----------------------------------------------------------------------------
def _pack_sb(scale, bias, cout_store):
    Cout = scale.shape[0]
    sb = jnp.stack([jnp.pad(scale, (0, cout_store - Cout)),
                    jnp.pad(bias, (0, cout_store - Cout))])
    return sb.astype(jnp.float32)          # (2, cout_store)


def _prep_matmul_conv(w, scale, bias, cin_store):
    # (KH*KW*cin_store, cout_store) layout for im2col / 1x1 matmuls
    Cout, Cin, KH, KW = w.shape
    cout_store = _rup(Cout, LANE)
    wt = jnp.transpose(w, (2, 3, 1, 0))    # (KH, KW, Cin, Cout)
    wt = jnp.pad(wt, ((0, 0), (0, 0), (0, cin_store - Cin),
                      (0, cout_store - Cout)))
    wm = wt.reshape(KH * KW * cin_store, cout_store).astype(jnp.bfloat16)
    return dict(w=wm, sb=_pack_sb(scale, bias, cout_store), kh=KH, kw=KW)


def _prep_direct_conv(w, scale, bias, cin_store):
    # (9, cin_store, cout_store) layout for the direct 3x3 kernel
    Cout, Cin, KH, KW = w.shape
    cout_store = _rup(Cout, LANE)
    wt = jnp.transpose(w, (2, 3, 1, 0))    # (3, 3, Cin, Cout)
    wt = jnp.pad(wt, ((0, 0), (0, 0), (0, cin_store - Cin),
                      (0, cout_store - Cout)))
    wm = wt.reshape(KH * KW, cin_store, cout_store).astype(jnp.bfloat16)
    return dict(w=wm, sb=_pack_sb(scale, bias, cout_store))


def prepare_params(raw):
    pp = {"stem": _prep_matmul_conv(raw["stem"]["w"], raw["stem"]["scale"],
                                    raw["stem"]["bias"], cin_store=3)}
    for lname in ("layer1", "layer2", "layer3", "layer4"):
        blocks = []
        for blk in raw[lname]:
            cin0 = _rup(blk["w1"].shape[1], LANE)
            mid = _rup(blk["w2"].shape[1], LANE)
            bp = {
                "stride": blk["stride"],
                "c1": _prep_matmul_conv(blk["w1"], blk["s1"], blk["b1"], cin0),
                "c3": _prep_matmul_conv(blk["w3"], blk["s3"], blk["b3"],
                                        _rup(blk["w3"].shape[1], LANE)),
            }
            if blk["stride"] == 1:
                bp["c2"] = _prep_direct_conv(blk["w2"], blk["s2"], blk["b2"],
                                             mid)
            else:
                bp["c2"] = _prep_matmul_conv(blk["w2"], blk["s2"], blk["b2"],
                                             mid)
            if "wd" in blk:
                bp["cd"] = _prep_matmul_conv(blk["wd"], blk["sd"], blk["bd"],
                                             cin0)
            blocks.append(bp)
        pp[lname] = blocks
    return pp


# ----------------------------------------------------------------------------
# Deterministic parameter init (synthetic; no checkpoint load)
# ----------------------------------------------------------------------------
class KeyGen:
    def __init__(self, key):
        self.key = key
        self.i = 0

    def __call__(self):
        self.i += 1
        return jax.random.fold_in(self.key, self.i)


def init_params(seed=0):
    kg = KeyGen(jax.random.PRNGKey(seed))

    def conv_w(cout, cin, kh, kw):
        fan_in = cin * kh * kw
        return jax.random.normal(kg(), (cout, cin, kh, kw),
                                 jnp.float32) * jnp.sqrt(2.0 / fan_in)

    def bn(c):
        # eval-mode BN folded to (scale, bias)
        eps = 1e-5
        gamma = 1.0 + 0.1 * jax.random.normal(kg(), (c,), jnp.float32)
        beta = 0.1 * jax.random.normal(kg(), (c,), jnp.float32)
        mean = 0.1 * jax.random.normal(kg(), (c,), jnp.float32)
        var = 1.0 + 0.1 * jax.random.uniform(kg(), (c,), jnp.float32)
        scale = gamma / jnp.sqrt(var + eps)
        bias = beta - mean * scale
        return scale, bias

    params = {}
    w = conv_w(64, 3, 7, 7)
    s, b = bn(64)
    params["stem"] = dict(w=w, scale=s, bias=b)

    inplanes = 64
    cfg = [("layer1", 64, 3, 1), ("layer2", 128, 4, 2),
           ("layer3", 256, 6, 2), ("layer4", 512, 3, 2)]
    for name, planes, nblocks, stride in cfg:
        blocks = []
        for bi in range(nblocks):
            st = stride if bi == 0 else 1
            blk = {"stride": st}
            blk["w1"] = conv_w(planes, inplanes, 1, 1)
            blk["s1"], blk["b1"] = bn(planes)
            blk["w2"] = conv_w(planes, planes, 3, 3)
            blk["s2"], blk["b2"] = bn(planes)
            blk["w3"] = conv_w(planes * 4, planes, 1, 1)
            blk["s3"], blk["b3"] = bn(planes * 4)
            if st != 1 or inplanes != planes * 4:
                blk["wd"] = conv_w(planes * 4, inplanes, 1, 1)
                blk["sd"], blk["bd"] = bn(planes * 4)
            blocks.append(blk)
            inplanes = planes * 4
        params[name] = blocks
    return params


if __name__ == "__main__":
    raw = init_params(0)
    params = prepare_params(raw)   # one-time weight layout / BN-fold prep
    # small, shape-consistent input: conv1/maxpool/layer2-4 divide spatial by 32
    x = jax.random.normal(jax.random.PRNGKey(0), (2, 3, 32, 32), jnp.float32)
    out = resnet50_forward(x, params)
    out = jax.block_until_ready(out)
    assert out.shape == (2, 2048), out.shape
    assert bool(jnp.all(jnp.isfinite(out)))
    print("KERNEL_OK")
</pallas_src>

<mosaic_0001>
module attributes {stable_mosaic.version = 11 : i64} {
  func.func @kernel(%arg0: i32, %arg1: memref<256x147xbf16, #tpu.memory_space<vmem>>, %arg2: memref<147x128xbf16, #tpu.memory_space<vmem>>, %arg3: memref<2x128xf32, #tpu.memory_space<vmem>>, %arg4: memref<256x128xbf16, #tpu.memory_space<vmem>>) attributes {dimension_semantics = [#tpu.dimension_semantics<parallel>], iteration_bounds = array<i64: 2>, scalar_prefetch = 0 : i64, scratch_operands = 0 : i64, tpu.core_type = #tpu.core_type<tc>, window_params = [{transform_indices = @transform_0, window_bounds = array<i64: 256, 147>}, {pipeline_mode = #tpu.pipeline_mode<synchronous>, transform_indices = @transform_1, window_bounds = array<i64: 147, 128>}, {pipeline_mode = #tpu.pipeline_mode<synchronous>, transform_indices = @transform_2, window_bounds = array<i64: 2, 128>}, {transform_indices = @transform_3, window_bounds = array<i64: 256, 128>}]} {
    %c0 = arith.constant 0 : index
    %c0_0 = arith.constant 0 : index
    %0 = vector.load %arg1[%c0, %c0_0] : memref<256x147xbf16, #tpu.memory_space<vmem>>, vector<256x147xbf16>
    %c0_1 = arith.constant 0 : index
    %c0_2 = arith.constant 0 : index
    %1 = vector.load %arg2[%c0_1, %c0_2] : memref<147x128xbf16, #tpu.memory_space<vmem>>, vector<147x128xbf16>
    %cst = arith.constant dense<0.000000e+00> : vector<256x128xf32>
    %2 = tpu.matmul %0, %1, %cst {dimension_numbers = #tpu.dot_dimension_numbers<[1], [0], [0], [1], [0, 0, 1, 1], [], []>} : vector<256x147xbf16>, vector<147x128xbf16>, vector<256x128xf32> -> vector<256x128xf32>
    %c0_3 = arith.constant 0 : index
    %c0_4 = arith.constant 0 : index
    %3 = vector.load %arg3[%c0_3, %c0_4] : memref<2x128xf32, #tpu.memory_space<vmem>>, vector<1x128xf32>
    %4 = vector.broadcast %3 : vector<1x128xf32> to vector<256x128xf32>
    %5 = arith.mulf %2, %4 : vector<256x128xf32>
    %c1 = arith.constant 1 : index
    %c0_5 = arith.constant 0 : index
    %6 = vector.load %arg3[%c1, %c0_5] : memref<2x128xf32, #tpu.memory_space<vmem>>, vector<1x128xf32>
    %7 = vector.broadcast %6 : vector<1x128xf32> to vector<256x128xf32>
    %8 = arith.addf %5, %7 : vector<256x128xf32>
    %cst_6 = arith.constant 0.000000e+00 : f32
    %9 = vector.broadcast %cst_6 : f32 to vector<256x128xf32>
    %10 = arith.maximumf %8, %9 : vector<256x128xf32>
    %11 = arith.truncf %10 : vector<256x128xf32> to vector<256x128xbf16>
    %c0_7 = arith.constant 0 : index
    %c0_8 = arith.constant 0 : index
    %12 = vector.load %arg4[%c0_7, %c0_8] : memref<256x128xbf16, #tpu.memory_space<vmem>>, vector<256x128xbf16>
    tpu.vector_store %arg4[%c0_7, %c0_8], %11 {strides = array<i32>} : memref<256x128xbf16, #tpu.memory_space<vmem>>, vector<256x128xbf16>,
    return
  }
  func.func @transform_0(%arg0: i32) -> (i32, i32) {
    %c0_i32 = arith.constant 0 : i32
    %c0_i32_0 = arith.constant 0 : i32
    return %arg0, %c0_i32 : i32, i32
  }
  func.func @transform_1(%arg0: i32) -> (i32, i32) {
    %c0_i32 = arith.constant 0 : i32
    %c0_i32_0 = arith.constant 0 : i32
    %c0_i32_1 = arith.constant 0 : i32
    return %c0_i32, %c0_i32_0 : i32, i32
  }
  func.func @transform_2(%arg0: i32) -> (i32, i32) {
    %c0_i32 = arith.constant 0 : i32
    %c0_i32_0 = arith.constant 0 : i32
    %c0_i32_1 = arith.constant 0 : i32
    return %c0_i32, %c0_i32_0 : i32, i32
  }
  func.func @transform_3(%arg0: i32) -> (i32, i32) {
    %c0_i32 = arith.constant 0 : i32
    %c0_i32_0 = arith.constant 0 : i32
    return %arg0, %c0_i32 : i32, i32
  }
}

</mosaic_0001>

<bundles_post_ra>
// kernel: tpu_custom_call.1
= control target key start
LH: loop header
LB: loop body
LE: loop exit
PB: predicated region body
PF: predicated region fallthrough
CT: control target
= control target key end

     0   :  { %8 = vsyncpa [#allocation3], 0  ;;  %s1707_s0 = inlined_call_operand.vmem [shape: bf16[512,147], index: 0, kind: input, shape index: {}]   ;;  %s1708_s1 = inlined_call_operand.vmem [shape: bf16[147,128], index: 1, kind: input, shape index: {}]   ;;  %s1709_s2 = inlined_call_operand.vmem [shape: f32[2,128], index: 2, kind: input, shape index: {}]   ;;  %s1710_s3 = inlined_call_operand.hbm [shape: bf16[512,128], index: 3, kind: output, shape index: {}]  }
   0x1   :  { %10 = vsyncpa [#allocation3 + $0x1], 0  ;;  %s1429_s12 = smov 0   ;;  %s1431_s13 = smov 0  }
   0x2   :  { %s1433_s14 = smov 0   ;;  %s1435_s15 = smov 0  }
   0x3 LB: > { %s1450_s16 = sadd.s32 4294967295, %s1402_s15   ;;  %s987_s17 = sadd.s32 4294967294, %s1402_s15   ;;  %s1402_s15 = sphi %s1435_s15, %s1716_s15   ;;  %s1398_s14 = sphi %s1433_s14, %s1715_s14   ;;  %s1394_s13 = sphi %s1431_s13, %s1714_s13   ;;  %s1390_s12 = sphi %s1429_s12, %s1713_s12  }
   0x4   : > { %s1454_s18 = sadd.s32 1, %s1402_s15   ;;  %s91_s19 = sadd.s32 1, %s1398_s14 }
   0x5   : > { %s88_s20 = ssub.s32 %s1402_s15, %s1454_s18  ;;  %p101_p0 = scmp.ne.s32.totalorder %s1398_s14, %s1394_s13 }
   0x6   : > { %p89_p1 = scmp.eq.s32.totalorder %s88_s20, 0  ;;  %p102_p2 = scmp.eq.s32.totalorder %s1450_s16, 1 }
   0x7   : > { %p107_p3 = scmp.ne.s32.totalorder %s1394_s13, %s1390_s12  ;;  %p108_p4 = scmp.eq.s32.totalorder %s987_s17, 1 }
   0x8   : > { %s1465_s21 = scalar_select %p89_p1, %s1398_s14, %s91_s19  }
   0x9   : > { %p1467_p5 = por %p102_p2, %p101_p0  ;;  %p1471_p6 = por %p108_p4, %p107_p3 }
   0xa   : > { %p990_p7 = scmp.ge.s32.totalorder %s1402_s15, 1  ;;  %p142_p8 = scmp.lt.s32.totalorder %s1402_s15, 3 }
   0xc   : > { %p143_p9 = pnand %p990_p7, %p142_p8 }
   0xd   : > { %s992_s30 = sshll.u32 (!%p143_p9), %s1450_s16, 5  ;;  %s164_s8 = sand.u32 (!%p143_p9), 1, %s1394_s13  }
   0xe   : > { %146 = sbr.rel (%p143_p9) target bundleno = 335 (0x14f), region = 32  ;;  %p168_p10 = scmp.lt.s32.totalorder (!%p143_p9), %s992_s30, 63 }
   0xf   : > { %s1125_s11 = sshll.u32 (!%p143_p9), %s1450_s16, 11  ;;  %s1667_s16 = scalar_lea.sflag (!%p143_p9), [#allocation3], %s164_s8 }
  0x10   : > { %s1659_s24 = scalar_lea.hbm (!%p143_p9), %s1710_s3, %s1125_s11  ;;  %s1406_s26 = smov (!%p143_p9), [#allocation2]  }
  0x11   : > { %s1346_s27 = sshll.u32 (!%p143_p9), %s1406_s26, 4  ;;  %s1347_s27 = int_to_ptr.vmem [resolvable:$false] %s1346_s27 }
  0x12   : > { %s1348_s28 = scalar_lea.vmem (!%p143_p9), %s1347_s27, 4096 }
  0x13   : > { %v1284_v0 = vld [vmem:[%s1708_s1 + $0x38] sm:$0xff]   ;;  %v1404_v1 = vmov 0   ;;  %v1285_v2 = vld [vmem:[%s1708_s1 + $0x30] sm:$0xff]   ;;  %v1286_v3 = vld [vmem:[%s1708_s1 + $0x28] sm:$0xff]   ;;  %s1718_s30 = smov (!%p168_p10, %s992_s30), 63  ;;  %vm428_vm0 = vcmask 154624  }
  0x14   : > { %484 = vmatprep.subr.bf16.mxu0 %v1404_v1  ;;  %1221 = vmatprep.subr.bf16.mxu1 %v1404_v1  ;;  %v1287_v4 = vld [vmem:[%s1708_s1 + $0x20] sm:$0xff]   ;;  %s1092_s6 = sshll.u32 %s1718_s30, 3  ;;  %v1288_v5 = vld [vmem:[%s1708_s1 + $0x18] sm:$0xff]   ;;  %v1289_v8 = vld [vmem:[%s1708_s1 + $0x10] sm:$0xff]   ;;  %vm477_vm1 = vcmask 1040384   ;;  %vm478_vm2 = vcmask 1041408  }
  0x15   : > { %485 = vmatpush1.bf16.msra.mxu0 %v1284_v0  ;;  %1231 = vmatpush1.bf16.msra.mxu1 %v1284_v0  ;;  %s1493_s9 = scalar_lea.vmem %s1707_s0, %s1092_s6  ;;  %v1290_v9 = vld [vmem:[%s1708_s1 + $0x8] sm:$0xff]   ;;  %v1405_v10 = vmov 65535   ;;  %v1291_v12 = vld [vmem:[%s1708_s1] sm:$0xff]  }
  0x16   : > { %486 = vmatprep.subr.bf16.mxu0 %v1404_v1  ;;  %1222 = vmatprep.subr.bf16.mxu1 %v1404_v1  ;;  %v1296_v6 = vld [vmem:[%s1493_s9 + $0x4] ss:$8 sps:$4 sm:$0xff]   ;;  %v479_v11 = vsel %vm477_vm1, 4294967295, %v1405_v10  ;;  %v1292_v13 = vld [vmem:[%s1708_s1 + $0x48] ss:$0 sps:$4 sm:$0x33]  }
  0x17   : > { %v1299_v7 = vld [vmem:[%s1493_s9 + $0x84] ss:$8 sps:$4 sm:$0xff]   ;;  %1037 = vmatprep.mubr.msk.bf16.mxu0 %vm428_vm0, %v1296_v6  ;;  %v480_v14 = vsel %vm478_vm2, %v479_v11, 0  ;;  %v1294_v17 = vld [vmem:[%s1493_s9] ss:$8 sps:$4 sm:$0xff]  }
  0x18   : > { %1045 = vmatprep.mubr.msk.bf16.mxu1 %vm428_vm0, %v1299_v7  ;;  %v482_v15 = vand.u32 %v1292_v13, %v480_v14  ;;  %v1293_v16 = vld [vmem:[%s1708_s1 + $0x40] sm:$0xff]   ;;  %v1300_v19 = vld [vmem:[%s1493_s9 + $0x14] ss:$8 sps:$4 sm:$0xff]   ;;  %v1304_v21 = vld [vmem:[%s1493_s9 + $0x10] ss:$8 sps:$4 sm:$0xff]  }
  0x19   : > { %487 = vmatpush1.bf16.msra.mxu0 %v1285_v2  ;;  %1232 = vmatpush1.bf16.msra.mxu1 %v1285_v2  ;;  %v1297_v18 = vld [vmem:[%s1493_s9 + $0x80] ss:$8 sps:$4 sm:$0xff]   ;;  %v1302_v20 = vld [vmem:[%s1493_s9 + $0x94] ss:$8 sps:$4 sm:$0xff]   ;;  %v1305_v22 = vld [vmem:[%s1493_s9 + $0x90] ss:$8 sps:$4 sm:$0xff]  }
  0x1a   : > { %488 = vmatprep.subr.bf16.mxu0 %v1404_v1  ;;  %1223 = vmatprep.subr.bf16.mxu1 %v1404_v1  ;;  %v1306_v23 = vld [vmem:[%s1493_s9 + $0x24] ss:$8 sps:$4 sm:$0xff]   ;;  %v1310_v25 = vld [vmem:[%s1493_s9 + $0x20] ss:$8 sps:$4 sm:$0xff]   ;;  %v1312_v27 = vld [vmem:[%s1493_s9 + $0x34] ss:$8 sps:$4 sm:$0xff]  }
  0x1b   : > { %v1308_v24 = vld [vmem:[%s1493_s9 + $0xa4] ss:$8 sps:$4 sm:$0xff]   ;;  %v1311_v26 = vld [vmem:[%s1493_s9 + $0xa0] ss:$8 sps:$4 sm:$0xff]   ;;  %v1314_v28 = vld [vmem:[%s1493_s9 + $0xb4] ss:$8 sps:$4 sm:$0xff]  }
  0x1c   : > { %v1316_v29 = vld [vmem:[%s1493_s9 + $0x30] ss:$8 sps:$4 sm:$0xff]   ;;  %v1318_v31 = vld [vmem:[%s1493_s9 + $0x44] ss:$8 sps:$4 sm:$0xff]   ;;  %v1322_v33 = vld [vmem:[%s1493_s9 + $0x40] ss:$8 sps:$4 sm:$0xff]  }
  0x1d   : > { %489 = vmatpush1.bf16.msra.mxu0 %v1286_v3  ;;  %1233 = vmatpush1.bf16.msra.mxu1 %v1286_v3  ;;  %v1317_v30 = vld [vmem:[%s1493_s9 + $0xb0] ss:$8 sps:$4 sm:$0xff]   ;;  %v1320_v32 = vld [vmem:[%s1493_s9 + $0xc4] ss:$8 sps:$4 sm:$0xff]   ;;  %v1323_v34 = vld [vmem:[%s1493_s9 + $0xc0] ss:$8 sps:$4 sm:$0xff]  }
  0x1e   : > { %490 = vmatprep.subr.bf16.mxu0 %v1404_v1  ;;  %1224 = vmatprep.subr.bf16.mxu1 %v1404_v1  ;;  %v1324_v35 = vld [vmem:[%s1493_s9 + $0x54] ss:$8 sps:$4 sm:$0xff]   ;;  %v1328_v37 = vld [vmem:[%s1493_s9 + $0x50] ss:$8 sps:$4 sm:$0xff]   ;;  %v1330_v39 = vld [vmem:[%s1493_s9 + $0x64] ss:$8 sps:$4 sm:$0xff]  }
  0x1f   : > { %v1326_v36 = vld [vmem:[%s1493_s9 + $0xd4] ss:$8 sps:$4 sm:$0xff]   ;;  %v1329_v38 = vld [vmem:[%s1493_s9 + $0xd0] ss:$8 sps:$4 sm:$0xff]   ;;  %v1332_v40 = vld [vmem:[%s1493_s9 + $0xe4] ss:$8 sps:$4 sm:$0xff]  }
  0x20   : > { %v1334_v41 = vld [vmem:[%s1493_s9 + $0x60] ss:$8 sps:$4 sm:$0xff]   ;;  %v1336_v43 = vld [vmem:[%s1493_s9 + $0x74] ss:$8 sps:$4 sm:$0xff]   ;;  %v1340_v45 = vld [vmem:[%s1493_s9 + $0x70] ss:$8 sps:$4 sm:$0xff]  }
  0x21   : > { %491 = vmatpush1.bf16.msra.mxu0 %v1287_v4  ;;  %1234 = vmatpush1.bf16.msra.mxu1 %v1287_v4  ;;  %v1335_v42 = vld [vmem:[%s1493_s9 + $0xe0] ss:$8 sps:$4 sm:$0xff]   ;;  %v1338_v44 = vld [vmem:[%s1493_s9 + $0xf4] ss:$8 sps:$4 sm:$0xff]   ;;  %v1341_v46 = vld [vmem:[%s1493_s9 + $0xf0] ss:$8 sps:$4 sm:$0xff]  }
  0x22   : > { %492 = vmatprep.subr.bf16.mxu0 %v1404_v1  ;;  %1225 = vmatprep.subr.bf16.mxu1 %v1404_v1  ;;  %v1564_v47 = vld [vmem:[%s1709_s2] ss:$0 sm:$0xff]  ;;  %v1570_v51 = vld [vmem:[%s1709_s2 + $0x1] ss:$0 sm:$0xff]  ;;  %s991_s9 = sshll.u32 %s164_s8, 7 }
  0x23   : > { %s1586_s10 = scalar_lea.vmem [#allocation2], %s991_s9 }
  0x24   : > { %s925_s17 = sshll.u32 %s1586_s10, 4  ;;  %s1661_s17 = int_to_ptr.vmem [resolvable:$true] %s925_s17 }
  0x25   : > { %493 = vmatpush1.bf16.msra.mxu0 %v1288_v5  ;;  %1235 = vmatpush1.bf16.msra.mxu1 %v1288_v5  ;;  %s1342_s25 = scalar_lea.vmem %s1661_s17, 2048  ;;  %p1349_p0 = scmp.lt.s32.totalorder %s1661_s17, %s1347_s27 }
  0x26   : > { %494 = vmatprep.subr.bf16.mxu0 %v1404_v1  ;;  %1226 = vmatprep.subr.bf16.mxu1 %v1404_v1  ;;  %p1343_p11 = scmp.ne.s32.totalorder %s1661_s17, %s1342_s25  ;;  %p1350_p1 = scmp.lt.s32.totalorder %s1348_s28, %s1342_s25 }
  0x28   : > { %p1344_p12 = pnand %p1343_p11, %p1467_p5  ;;  %p1351_p2 = por %p1350_p1, %p1349_p0 }
  0x29   : > { %495 = vmatpush1.bf16.msra.mxu0 %v1289_v8  ;;  %1236 = vmatpush1.bf16.msra.mxu1 %v1289_v8 }
  0x2a   : > { %496 = vmatprep.subr.bf16.mxu0 %v1404_v1  ;;  %1227 = vmatprep.subr.bf16.mxu1 %v1404_v1  ;;  %p1345_p13 = pneg %p1344_p12 }
  0x2c   : > { %p1352_p3 = pnand %p1351_p2, %p1345_p13 }
  0x2d   : > { %497 = vmatpush1.bf16.msra.mxu0 %v1290_v9  ;;  %1237 = vmatpush1.bf16.msra.mxu1 %v1290_v9 }
  0x2e   : > { %498 = vmatprep.subr.bf16.mxu0 %v1404_v1  ;;  %1228 = vmatprep.subr.bf16.mxu1 %v1404_v1 }
  0x31   : > { %499 = vmatpush1.bf16.msra.mxu0 %v1291_v12  ;;  %1238 = vmatpush1.bf16.msra.mxu1 %v1291_v12 }
  0x32   : > { %512 = vmatprep.subr.bf16.mxu0 %v1404_v1  ;;  %1229 = vmatprep.subr.bf16.mxu1 %v1404_v1 }
  0x35   : > { %513 = vmatpush2.bf16.msra.mxu0 %v482_v15  ;;  %1239 = vmatpush2.bf16.msra.mxu1 %v482_v15 }
  0x36   : > { %514 = vmatprep.subr.bf16.mxu0 %v1404_v1  ;;  %1230 = vmatprep.subr.bf16.mxu1 %v1404_v1 }
  0x39   : > { %515 = vmatpush2.bf16.msra.mxu0 %v1293_v16  ;;  %1240 = vmatpush2.bf16.msra.mxu1 %v1293_v16 }
  0x3c   : > { %517 = vmatmul.mubr.bf16.vlgmr.msra.gmra.mxu0 %v1294_v17  ;;  %581 = vmatmul.mubr.bf16.vlgmr.msra.gmra.mxu1 %v1297_v18 }
  0x3d   : > { %1038 = vmatprep.mubr.msk.bf16.mxu0 %vm428_vm0, %v1300_v19  ;;  %1046 = vmatprep.mubr.msk.bf16.mxu1 %vm428_vm0, %v1302_v20 }
  0x44   : > { %525 = vmatmul.mubr.bf16.gmra.mxu0 %v1304_v21  ;;  %589 = vmatmul.mubr.bf16.gmra.mxu1 %v1305_v22 }
  0x45   : > { %1039 = vmatprep.mubr.msk.bf16.mxu0 %vm428_vm0, %v1306_v23  ;;  %1047 = vmatprep.mubr.msk.bf16.mxu1 %vm428_vm0, %v1308_v24 }
  0x4c   : > { %533 = vmatmul.mubr.bf16.gmra.mxu0 %v1310_v25  ;;  %597 = vmatmul.mubr.bf16.gmra.mxu1 %v1311_v26 }
  0x4d   : > { %1040 = vmatprep.mubr.msk.bf16.mxu0 %vm428_vm0, %v1312_v27  ;;  %1048 = vmatprep.mubr.msk.bf16.mxu1 %vm428_vm0, %v1314_v28 }
  0x54   : > { %541 = vmatmul.mubr.bf16.gmra.mxu0 %v1316_v29  ;;  %605 = vmatmul.mubr.bf16.gmra.mxu1 %v1317_v30 }
  0x55   : > { %1041 = vmatprep.mubr.msk.bf16.mxu0 %vm428_vm0, %v1318_v31  ;;  %1049 = vmatprep.mubr.msk.bf16.mxu1 %vm428_vm0, %v1320_v32 }
  0x5c   : > { %549 = vmatmul.mubr.bf16.gmra.mxu0 %v1322_v33  ;;  %613 = vmatmul.mubr.bf16.gmra.mxu1 %v1323_v34 }
  0x5d   : > { %1042 = vmatprep.mubr.msk.bf16.mxu0 %vm428_vm0, %v1324_v35  ;;  %1050 = vmatprep.mubr.msk.bf16.mxu1 %vm428_vm0, %v1326_v36 }
  0x64   : > { %557 = vmatmul.mubr.bf16.gmra.mxu0 %v1328_v37  ;;  %621 = vmatmul.mubr.bf16.gmra.mxu1 %v1329_v38 }
  0x65   : > { %1043 = vmatprep.mubr.msk.bf16.mxu0 %vm428_vm0, %v1330_v39  ;;  %1051 = vmatprep.mubr.msk.bf16.mxu1 %vm428_vm0, %v1332_v40 }
  0x6c   : > { %565 = vmatmul.mubr.bf16.gmra.mxu0 %v1334_v41  ;;  %629 = vmatmul.mubr.bf16.gmra.mxu1 %v1335_v42 }
  0x6d   : > { %1044 = vmatprep.mubr.msk.bf16.mxu0 %vm428_vm0, %v1336_v43  ;;  %1052 = vmatprep.mubr.msk.bf16.mxu1 %vm428_vm0, %v1338_v44 }
  0x74   : > { %573 = vmatmul.mubr.bf16.gmra.mxu0 %v1340_v45  ;;  %637 = vmatmul.mubr.bf16.gmra.mxu1 %v1341_v46 }
  0xfc   : > { %v518_v48 = vpop.f32.mrf.mxu0  ;;  %v582_v49 = vpop.f32.mrf.mxu1 }
  0xfd   : > { %v650_v50 = vmul.f32 %v1564_v47, %v518_v48  ;;  %v666_v52 = vmul.f32 %v1564_v47, %v582_v49 }
  0xfe   : > { %v520_v53 = vpop.f32.mrf.mxu0  ;;  %v584_v54 = vpop.f32.mrf.mxu1 }
  0xff   : > { %v687_v55 = vadd.f32 %v1570_v51, %v650_v50  ;;  %v703_v56 = vadd.f32 %v1570_v51, %v666_v52 }
 0x100   : > { %v521_v57 = vpop.f32.mrf.mxu0  ;;  %v585_v58 = vpop.f32.mrf.mxu1 }
 0x101   : > { %v651_v59 = vmul.f32 %v1564_v47, %v521_v57  ;;  %v667_v60 = vmul.f32 %v1564_v47, %v585_v58  ;;  %v719_v1 = vmax.f32 %v687_v55, 0.0  ;;  %v735_v2 = vmax.f32 %v703_v56, 0.0 }
 0x102   : > { %v523_v61 = vpop.f32.mrf.mxu0  ;;  %v587_v62 = vpop.f32.mrf.mxu1 }
 0x103   : > { %v688_v63 = vadd.f32 %v1570_v51, %v651_v59  ;;  %v704_v0 = vadd.f32 %v1570_v51, %v667_v60 }
 0x104   : > { %v526_v3 = vpop.f32.mrf.mxu0  ;;  %v590_v4 = vpop.f32.mrf.mxu1 }
 0x105   : > { %v720_v5 = vmax.f32 %v688_v63, 0.0  ;;  %v736_v6 = vmax.f32 %v704_v0, 0.0  ;;  %v652_v7 = vmul.f32 %v1564_v47, %v526_v3  ;;  %v668_v8 = vmul.f32 %v1564_v47, %v590_v4 }
 0x106   : > { %v528_v9 = vpop.f32.mrf.mxu0  ;;  %v592_v10 = vpop.f32.mrf.mxu1 }
 0x107   : > { %v1129_v11 = vpack.c.bf16 %v720_v5, %v719_v1  ;;  %v1169_v12 = vpack.c.bf16 %v736_v6, %v735_v2  ;;  %v689_v13 = vadd.f32 %v1570_v51, %v652_v7  ;;  %v705_v14 = vadd.f32 %v1570_v51, %v668_v8 }
 0x108   : > { %v529_v15 = vpop.f32.mrf.mxu0  ;;  %v593_v16 = vpop.f32.mrf.mxu1 }
 0x109   : > { %1130 = vst [vmem:[%s1586_s10] sm:$0xff] %v1129_v11   ;;  %1213 = vst [vmem:[%s1586_s10 + $0x40] sm:$0xff] %v1169_v12   ;;  %v653_v17 = vmul.f32 %v1564_v47, %v529_v15  ;;  %v669_v18 = vmul.f32 %v1564_v47, %v593_v16  ;;  %v721_v23 = vmax.f32 %v689_v13, 0.0  ;;  %v737_v24 = vmax.f32 %v705_v14, 0.0 }
 0x10a   : > { %v531_v19 = vpop.f32.mrf.mxu0  ;;  %v595_v20 = vpop.f32.mrf.mxu1 }
 0x10b   : > { %v690_v21 = vadd.f32 %v1570_v51, %v653_v17  ;;  %v706_v22 = vadd.f32 %v1570_v51, %v669_v18 }
 0x10c   : > { %v534_v25 = vpop.f32.mrf.mxu0  ;;  %v598_v26 = vpop.f32.mrf.mxu1 }
 0x10d   : > { %v722_v27 = vmax.f32 %v690_v21, 0.0  ;;  %v738_v28 = vmax.f32 %v706_v22, 0.0  ;;  %v654_v29 = vmul.f32 %v1564_v47, %v534_v25  ;;  %v670_v30 = vmul.f32 %v1564_v47, %v598_v26 }
 0x10e   : > { %v536_v31 = vpop.f32.mrf.mxu0  ;;  %v600_v32 = vpop.f32.mrf.mxu1 }
 0x10f   : > { %v1134_v33 = vpack.c.bf16 %v722_v27, %v721_v23  ;;  %v1174_v34 = vpack.c.bf16 %v738_v28, %v737_v24  ;;  %v691_v35 = vadd.f32 %v1570_v51, %v654_v29  ;;  %v707_v36 = vadd.f32 %v1570_v51, %v670_v30 }
 0x110   : > { %v537_v37 = vpop.f32.mrf.mxu0  ;;  %v601_v38 = vpop.f32.mrf.mxu1 }
 0x111   : > { %1206 = vst [vmem:[%s1586_s10 + $0x8] sm:$0xff] %v1134_v33   ;;  %1214 = vst [vmem:[%s1586_s10 + $0x48] sm:$0xff] %v1174_v34   ;;  %v655_v39 = vmul.f32 %v1564_v47, %v537_v37  ;;  %v671_v40 = vmul.f32 %v1564_v47, %v601_v38  ;;  %v723_v45 = vmax.f32 %v691_v35, 0.0  ;;  %v739_v46 = vmax.f32 %v707_v36, 0.0 }
 0x112   : > { %v539_v41 = vpop.f32.mrf.mxu0  ;;  %v603_v42 = vpop.f32.mrf.mxu1 }
 0x113   : > { %v692_v43 = vadd.f32 %v1570_v51, %v655_v39  ;;  %v708_v44 = vadd.f32 %v1570_v51, %v671_v40 }
 0x114   : > { %v542_v48 = vpop.f32.mrf.mxu0  ;;  %v606_v49 = vpop.f32.mrf.mxu1 }
 0x115   : > { %v724_v50 = vmax.f32 %v692_v43, 0.0  ;;  %v740_v52 = vmax.f32 %v708_v44, 0.0  ;;  %v656_v53 = vmul.f32 %v1564_v47, %v542_v48  ;;  %v672_v54 = vmul.f32 %v1564_v47, %v606_v49 }
 0x116   : > { %v544_v55 = vpop.f32.mrf.mxu0  ;;  %v608_v56 = vpop.f32.mrf.mxu1 }
 0x117   : > { %v1139_v57 = vpack.c.bf16 %v724_v50, %v723_v45  ;;  %v1179_v58 = vpack.c.bf16 %v740_v52, %v739_v46  ;;  %v693_v59 = vadd.f32 %v1570_v51, %v656_v53  ;;  %v709_v60 = vadd.f32 %v1570_v51, %v672_v54 }
 0x118   : > { %v545_v61 = vpop.f32.mrf.mxu0  ;;  %v609_v62 = vpop.f32.mrf.mxu1 }
 0x119   : > { %1207 = vst [vmem:[%s1586_s10 + $0x10] sm:$0xff] %v1139_v57   ;;  %1215 = vst [vmem:[%s1586_s10 + $0x50] sm:$0xff] %v1179_v58   ;;  %v657_v63 = vmul.f32 %v1564_v47, %v545_v61  ;;  %v673_v0 = vmul.f32 %v1564_v47, %v609_v62  ;;  %v725_v5 = vmax.f32 %v693_v59, 0.0  ;;  %v741_v6 = vmax.f32 %v709_v60, 0.0 }
 0x11a   : > { %v547_v1 = vpop.f32.mrf.mxu0  ;;  %v611_v2 = vpop.f32.mrf.mxu1 }
 0x11b   : > { %v694_v3 = vadd.f32 %v1570_v51, %v657_v63  ;;  %v710_v4 = vadd.f32 %v1570_v51, %v673_v0 }
 0x11c   : > { %v550_v7 = vpop.f32.mrf.mxu0  ;;  %v614_v8 = vpop.f32.mrf.mxu1 }
 0x11d   : > { %v726_v9 = vmax.f32 %v694_v3, 0.0  ;;  %v742_v10 = vmax.f32 %v710_v4, 0.0  ;;  %v658_v11 = vmul.f32 %v1564_v47, %v550_v7  ;;  %v674_v12 = vmul.f32 %v1564_v47, %v614_v8 }
 0x11e   : > { %v552_v13 = vpop.f32.mrf.mxu0  ;;  %v616_v14 = vpop.f32.mrf.mxu1 }
 0x11f   : > { %v1144_v15 = vpack.c.bf16 %v726_v9, %v725_v5  ;;  %v1184_v16 = vpack.c.bf16 %v742_v10, %v741_v6  ;;  %v695_v17 = vadd.f32 %v1570_v51, %v658_v11  ;;  %v711_v18 = vadd.f32 %v1570_v51, %v674_v12 }
 0x120   : > { %v553_v19 = vpop.f32.mrf.mxu0  ;;  %v617_v20 = vpop.f32.mrf.mxu1 }
 0x121   : > { %1208 = vst [vmem:[%s1586_s10 + $0x18] sm:$0xff] %v1144_v15   ;;  %1216 = vst [vmem:[%s1586_s10 + $0x58] sm:$0xff] %v1184_v16   ;;  %v659_v21 = vmul.f32 %v1564_v47, %v553_v19  ;;  %v675_v22 = vmul.f32 %v1564_v47, %v617_v20  ;;  %v727_v27 = vmax.f32 %v695_v17, 0.0  ;;  %v743_v28 = vmax.f32 %v711_v18, 0.0 }
 0x122   : > { %v555_v23 = vpop.f32.mrf.mxu0  ;;  %v619_v24 = vpop.f32.mrf.mxu1 }
 0x123   : > { %v696_v25 = vadd.f32 %v1570_v51, %v659_v21  ;;  %v712_v26 = vadd.f32 %v1570_v51, %v675_v22 }
 0x124   : > { %v558_v29 = vpop.f32.mrf.mxu0  ;;  %v622_v30 = vpop.f32.mrf.mxu1 }
 0x125   : > { %v728_v31 = vmax.f32 %v696_v25, 0.0  ;;  %v744_v32 = vmax.f32 %v712_v26, 0.0  ;;  %v660_v33 = vmul.f32 %v1564_v47, %v558_v29  ;;  %v676_v34 = vmul.f32 %v1564_v47, %v622_v30 }
 0x126   : > { %v560_v35 = vpop.f32.mrf.mxu0  ;;  %v624_v36 = vpop.f32.mrf.mxu1 }
 0x127   : > { %v1149_v37 = vpack.c.bf16 %v728_v31, %v727_v27  ;;  %v1189_v38 = vpack.c.bf16 %v744_v32, %v743_v28  ;;  %v697_v39 = vadd.f32 %v1570_v51, %v660_v33  ;;  %v713_v40 = vadd.f32 %v1570_v51, %v676_v34 }
 0x128   : > { %v561_v41 = vpop.f32.mrf.mxu0  ;;  %v625_v42 = vpop.f32.mrf.mxu1 }
 0x129   : > { %1209 = vst [vmem:[%s1586_s10 + $0x20] sm:$0xff] %v1149_v37   ;;  %1217 = vst [vmem:[%s1586_s10 + $0x60] sm:$0xff] %v1189_v38   ;;  %v661_v43 = vmul.f32 %v1564_v47, %v561_v41  ;;  %v677_v44 = vmul.f32 %v1564_v47, %v625_v42  ;;  %v729_v50 = vmax.f32 %v697_v39, 0.0  ;;  %v745_v52 = vmax.f32 %v713_v40, 0.0 }
 0x12a   : > { %v563_v45 = vpop.f32.mrf.mxu0  ;;  %v627_v46 = vpop.f32.mrf.mxu1 }
 0x12b   : > { %v698_v48 = vadd.f32 %v1570_v51, %v661_v43  ;;  %v714_v49 = vadd.f32 %v1570_v51, %v677_v44 }
 0x12c   : > { %v566_v53 = vpop.f32.mrf.mxu0  ;;  %v630_v54 = vpop.f32.mrf.mxu1 }
 0x12d   : > { %v730_v55 = vmax.f32 %v698_v48, 0.0  ;;  %v746_v56 = vmax.f32 %v714_v49, 0.0  ;;  %v662_v57 = vmul.f32 %v1564_v47, %v566_v53  ;;  %v678_v58 = vmul.f32 %v1564_v47, %v630_v54 }
 0x12e   : > { %v568_v59 = vpop.f32.mrf.mxu0  ;;  %v632_v60 = vpop.f32.mrf.mxu1 }
 0x12f   : > { %v1154_v61 = vpack.c.bf16 %v730_v55, %v729_v50  ;;  %v1194_v62 = vpack.c.bf16 %v746_v56, %v745_v52  ;;  %v699_v63 = vadd.f32 %v1570_v51, %v662_v57  ;;  %v715_v0 = vadd.f32 %v1570_v51, %v678_v58 }
 0x130   : > { %v569_v1 = vpop.f32.mrf.mxu0  ;;  %v633_v2 = vpop.f32.mrf.mxu1 }
 0x131   : > { %1210 = vst [vmem:[%s1586_s10 + $0x28] sm:$0xff] %v1154_v61   ;;  %1218 = vst [vmem:[%s1586_s10 + $0x68] sm:$0xff] %v1194_v62   ;;  %v663_v3 = vmul.f32 %v1564_v47, %v569_v1  ;;  %v679_v4 = vmul.f32 %v1564_v47, %v633_v2  ;;  %v731_v9 = vmax.f32 %v699_v63, 0.0  ;;  %v747_v10 = vmax.f32 %v715_v0, 0.0 }
 0x132   : > { %v571_v5 = vpop.f32.mrf.mxu0  ;;  %v635_v6 = vpop.f32.mrf.mxu1 }
 0x133   : > { %v700_v7 = vadd.f32 %v1570_v51, %v663_v3  ;;  %v716_v8 = vadd.f32 %v1570_v51, %v679_v4 }
 0x134   : > { %v574_v11 = vpop.f32.mrf.mxu0  ;;  %v638_v12 = vpop.f32.mrf.mxu1 }
 0x135   : > { %v732_v13 = vmax.f32 %v700_v7, 0.0  ;;  %v748_v14 = vmax.f32 %v716_v8, 0.0  ;;  %v664_v15 = vmul.f32 %v1564_v47, %v574_v11  ;;  %v680_v16 = vmul.f32 %v1564_v47, %v638_v12 }
 0x136   : > { %v576_v17 = vpop.f32.mrf.mxu0  ;;  %v640_v18 = vpop.f32.mrf.mxu1 }
 0x137   : > { %v1159_v19 = vpack.c.bf16 %v732_v13, %v731_v9  ;;  %v1199_v20 = vpack.c.bf16 %v748_v14, %v747_v10  ;;  %v701_v23 = vadd.f32 %v1570_v51, %v664_v15  ;;  %v717_v24 = vadd.f32 %v1570_v51, %v680_v16 }
 0x138   : > { %v577_v21 = vpop.f32.mrf.mxu0  ;;  %v641_v22 = vpop.f32.mrf.mxu1 }
 0x139   : > { %1211 = vst [vmem:[%s1586_s10 + $0x30] sm:$0xff] %v1159_v19   ;;  %1219 = vst [vmem:[%s1586_s10 + $0x70] sm:$0xff] %v1199_v20   ;;  %v665_v25 = vmul.f32 %v1564_v47, %v577_v21  ;;  %v681_v26 = vmul.f32 %v1564_v47, %v641_v22  ;;  %v733_v31 = vmax.f32 %v701_v23, 0.0  ;;  %v749_v32 = vmax.f32 %v717_v24, 0.0 }
 0x13a   : > { %v579_v27 = vpop.f32.mrf.mxu0  ;;  %v643_v28 = vpop.f32.mrf.mxu1 }
 0x13b   : > { %v702_v29 = vadd.f32 %v1570_v51, %v665_v25  ;;  %v718_v30 = vadd.f32 %v1570_v51, %v681_v26 }
 0x13d   : > { %v734_v33 = vmax.f32 %v702_v29, 0.0  ;;  %v750_v34 = vmax.f32 %v718_v30, 0.0 }
 0x13f   : > { %v1164_v47 = vpack.c.bf16 %v734_v33, %v733_v31  ;;  %v1204_v35 = vpack.c.bf16 %v750_v34, %v749_v32 }
 0x141   : > { %1212 = vst [vmem:[%s1586_s10 + $0x38] sm:$0xff] %v1164_v47   ;;  %1220 = vst [vmem:[%s1586_s10 + $0x78] sm:$0xff] %v1204_v35  }
 0x142   : > { %1355 = shalt.err (!%p1352_p3)
}
 0x143   : > { %s1356_s29 = scalar_lea.hbm %s1659_s24, 2048  ;;  %s1360_s5 = scalar_lea.hbm %s1710_s3, 4096 }
 0x144   : > { %p1357_p4 = scmp.ne.s32.totalorder %s1659_s24, %s1356_s29  ;;  %p1361_p9 = scmp.lt.s32.totalorder %s1659_s24, %s1710_s3 }
 0x145   : > { %p1362_p10 = scmp.lt.s32.totalorder %s1360_s5, %s1356_s29 }
 0x146   : > { %p1358_p7 = pnand %p1357_p4, %p1467_p5 }
 0x147   : > { %p1363_p11 = por %p1362_p10, %p1361_p9 }
 0x148   : > { %p1359_p8 = pneg %p1358_p7 }
 0x14a   : > { %p1364_p12 = pnand %p1363_p11, %p1359_p8 }
 0x14c   : > { %1367 = shalt.err (!%p1364_p12)
}
 0x14d   : > { %s1407_s8 = smov 64   ;;  %s1408_s9 = smov 4  }
 0x14e   : > { %1241 = dma.vmem_to_hbm [thread:$0]  (%p1467_p5), %s1661_s17, 2048, %s1659_s24, %s1667_s16, %s1407_s8, %s1407_s8, %s1408_s9  }
 0x14f PF: > { %p1247_p13 = scmp.ge.s32.totalorder %s1402_s15, 2  ;;  %s940_s10 = sand.u32 1, %s1390_s12  }
 0x150   : > { %s941_s11 = scalar_lea.sflag [#allocation3], %s940_s10 }
 0x151   : > { %p1244_p0 = pnand %p1247_p13, %p1471_p6 }
 0x153   : > { %p1245_p1 = pneg %p1244_p0 }
 0x155   : > { %1385 = dma.done.wait (%p1245_p1), %s941_s11, 2048  }
 0x156   : > { %1387 = vsyncadd (%p1245_p1), %s941_s11, 4294965248  ;;  %p13_p2 = scmp.ge.s32.totalorder %s1454_s18, 4   ;;  %s1713_s12 = smov %s1394_s13 }
 0x157   : > { %s1714_s13 = smov %s1398_s14  ;;  %s1715_s14 = smov %s1465_s21 }
 0x158   : > { %s1716_s15 = smov %s1454_s18  ;;  %15 = sbr.rel (!%p13_p2) target bundleno = 3 (0x3), region = 67 }
 0x15d   :  { %946 = vsyncpa [#allocation3], 1 }
 0x15e   :  { %948 = vsyncpa [#allocation3 + $0x1], 1 }

</bundles_post_ra>
